<compile_context>
chip_gen: v5e
topology: v5e:2x2
jax: 0.10.0
libtpu: 0.0.40
codegen_flags: <defaults>
</compile_context>

<pallas_src>
import functools

import jax
import jax.numpy as jnp
from jax import lax
from jax.experimental import pallas as pl
from jax.experimental.pallas import tpu as pltpu

LANE = 128
SUBLANE = 8


def _round_up(x, m):
    return (x + m - 1) // m * m


def _nbytes(shape, dtype):
    n = 1
    for d in shape:
        n *= int(d)
    return n * jnp.dtype(dtype).itemsize


def ffnn_kernel(tok_ref, table_ref, w1_ref, b1_ref, w2_ref, b2_ref, out_ref,
                *, seq_len, vocab):
    """One batch tile: token counts -> MXU gather-sum -> mean -> fc1 -> ReLU -> fc2."""
    tile_b = tok_ref.shape[0]
    tok = tok_ref[...]                                                # (Bt, S) int32

    # counts[b, v] = #{s : tok[b, s] == v}.  Built with lane-iota compares so the
    # embedding gather + sequence-sum become a single MXU matmul (no per-row DMA).
    vocab_iota = lax.broadcasted_iota(jnp.int32, (tile_b, vocab), 1)
    counts = jnp.zeros((tile_b, vocab), jnp.float32)
    for s in range(seq_len):            # static unroll; seq_len is small here
        counts = counts + (tok[:, s:s + 1] == vocab_iota).astype(jnp.float32)
    # TODO(synk): for long sequences switch the static unroll to lax.fori_loop.

    # Sum of embeddings over the sequence = counts @ table (MXU, f32 accumulate),
    # then scale by 1/S to get the mean (same op order as the reference).
    summed = jnp.dot(counts.astype(table_ref.dtype), table_ref[...],
                     preferred_element_type=jnp.float32)              # (Bt, D)
    mean = summed * (1.0 / seq_len)

    h = jnp.dot(mean.astype(w1_ref.dtype), w1_ref[...],
                preferred_element_type=jnp.float32) + b1_ref[...]     # fc1 (+bias, f32)
    h = jnp.maximum(h, 0.0).astype(w2_ref.dtype)                      # ReLU
    out = jnp.dot(h, w2_ref[...],
                  preferred_element_type=jnp.float32) + b2_ref[...]   # fc2 (+bias, f32)
    out_ref[...] = out.astype(out_ref.dtype)                          # lane-dense store


def prepare_ffnn_params(emb_table, w1, b1, w2, b2, *, compute_dtype=jnp.float32):
    """One-time parameter prep.  The embedding table is passed through unpadded;
    only the tiny fc weights are transposed / zero-padded to lane width."""
    V, D = emb_table.shape
    H = w1.shape[0]
    O = w2.shape[0]
    Hp, Op = _round_up(H, LANE), _round_up(O, LANE)

    # Zero padding keeps padded lanes inert: padded H lanes see zero W1 columns
    # and zero bias -> ReLU(0) = 0 -> zero W2 rows contribute nothing; padded O
    # lanes are sliced away after the kernel.
    table = emb_table.astype(compute_dtype)                            # (V, D), no copy/pad
    w1t = jnp.zeros((D, Hp), compute_dtype).at[:, :H].set(w1.T.astype(compute_dtype))
    b1r = jnp.zeros((1, Hp), jnp.float32).at[:, :H].set(b1.astype(jnp.float32))
    w2t = jnp.zeros((Hp, Op), compute_dtype).at[:H, :O].set(w2.T.astype(compute_dtype))
    b2r = jnp.zeros((1, Op), jnp.float32).at[:, :O].set(b2.astype(jnp.float32))
    return {"table": table, "w1t": w1t, "b1": b1r, "w2t": w2t, "b2": b2r}


@functools.partial(jax.jit, static_argnames=("out_features", "tile_b"))
def ffnn_forward(tokens, params, *, out_features, tile_b=None):
    """tokens: (B, S) int; params from prepare_ffnn_params.  Returns (B, out_features) f32."""
    table, w1t, b1, w2t, b2 = (params["table"], params["w1t"], params["b1"],
                               params["w2t"], params["b2"])
    B, S = tokens.shape
    V, D = table.shape
    Hp = w1t.shape[1]
    Op = w2t.shape[1]

    # Batch tile: sublane aligned.  128 matches v5e's MXU; on v6e/v7x with large
    # batches pass tile_b=256 to fill the 256-wide MXU (keep >=2 tiles for megacore).
    if tile_b is None:
        tile_b = min(128, _round_up(B, SUBLANE))
    tile_b = _round_up(tile_b, SUBLANE)
    Bp = _round_up(B, tile_b)

    # VMEM-resident-table path only; guard the budget explicitly (v7x: 64 MiB VMEM).
    table_bytes = _nbytes((V, D), table.dtype)
    if table_bytes > 8 * 1024 * 1024:
        # TODO(synk): large-vocab path (issue-ahead DMA row gather from HBM) not needed
        # for these shapes.
        raise NotImplementedError("embedding table too large for VMEM-resident path")

    # Compute the VMEM limit from actual (double-buffered) buffer sizes + margin.
    vmem_needed = 2 * (_nbytes((tile_b, S), jnp.int32) + table_bytes
                       + _nbytes((D, Hp), w1t.dtype) + _nbytes((1, Hp), jnp.float32)
                       + _nbytes((Hp, Op), w2t.dtype) + _nbytes((1, Op), jnp.float32)
                       + _nbytes((tile_b, Op), jnp.float32))
    vmem_limit = int(min(64 * 1024 * 1024, max(16 * 1024 * 1024, vmem_needed + (4 << 20))))

    # Padded token ids (padded rows read token 0; results are sliced away — with the
    # counts-matmul formulation there is no wasted DMA traffic for them).
    tok_p = jnp.zeros((Bp, S), jnp.int32).at[:B].set(tokens.astype(jnp.int32))

    kernel = functools.partial(ffnn_kernel, seq_len=S, vocab=V)

    out_padded = pl.pallas_call(
        kernel,
        out_shape=jax.ShapeDtypeStruct((Bp, Op), jnp.float32),
        grid=(Bp // tile_b,),
        in_specs=[
            pl.BlockSpec((tile_b, S), lambda i: (i, 0)),   # token-id tile
            pl.BlockSpec((V, D), lambda i: (0, 0)),        # embedding table, VMEM-resident
            pl.BlockSpec((D, Hp), lambda i: (0, 0)),       # W1^T resident across grid
            pl.BlockSpec((1, Hp), lambda i: (0, 0)),       # b1 resident
            pl.BlockSpec((Hp, Op), lambda i: (0, 0)),      # W2^T resident
            pl.BlockSpec((1, Op), lambda i: (0, 0)),       # b2 resident
        ],
        out_specs=pl.BlockSpec((tile_b, Op), lambda i: (i, 0)),
        compiler_params=pltpu.CompilerParams(
            dimension_semantics=("parallel",),             # batch tiles independent
            vmem_limit_bytes=vmem_limit,
        ),
    )(tok_p, table, w1t, b1, w2t, b2)

    return out_padded[:B, :out_features]                   # drop batch / lane padding


def xavier_uniform(key, shape):
    # shape = (fan_out, fan_in), matching torch.nn.Linear.weight
    fan_out, fan_in = shape
    bound = (6.0 / (fan_in + fan_out)) ** 0.5
    return jax.random.uniform(key, shape, jnp.float32, -bound, bound)


if __name__ == "__main__":
    # Small, deterministic setup consistent with the module:
    #   vocab=64, emb_dim=input_size=32, hidden=32, output=2, batch=2, seq=8
    vocab, input_size, hidden_size, output_size = 64, 32, 32, 2
    batch, seq = 2, 8

    key = jax.random.PRNGKey(0)
    k_emb, k_w1, k_b1, k_w2, k_b2, k_tok = jax.random.split(key, 6)

    emb_table = jax.random.normal(k_emb, (vocab, input_size), jnp.float32)
    w1 = xavier_uniform(k_w1, (hidden_size, input_size))
    w2 = xavier_uniform(k_w2, (output_size, hidden_size))
    # nn.Linear default bias init: U(-1/sqrt(fan_in), 1/sqrt(fan_in))
    b1 = jax.random.uniform(k_b1, (hidden_size,), jnp.float32,
                            -1.0 / input_size ** 0.5, 1.0 / input_size ** 0.5)
    b2 = jax.random.uniform(k_b2, (output_size,), jnp.float32,
                            -1.0 / hidden_size ** 0.5, 1.0 / hidden_size ** 0.5)

    tokens = jax.random.randint(k_tok, (batch, seq), 0, vocab, jnp.int32)

    # Prep once (hoisted out of the forward path), then run the fused kernel.
    params = prepare_ffnn_params(emb_table, w1, b1, w2, b2)  # compute_dtype=f32 default;
    # on v6e/v7x pass compute_dtype=jnp.bfloat16 for MXU throughput.
    out = ffnn_forward(tokens, params, out_features=output_size)
    jax.block_until_ready(out)

    # Pure-JAX reference of the same forward pass (gather -> mean -> fc1 -> ReLU -> fc2).
    mean = jnp.mean(emb_table[tokens].astype(jnp.float32), axis=1)
    ref = jnp.maximum(mean @ w1.T + b1, 0.0) @ w2.T + b2
    assert out.shape == (batch, output_size)
    assert jnp.allclose(out, ref, atol=1e-4, rtol=1e-4), (out, ref)

    print("KERNEL_OK")
</pallas_src>

<mosaic_0001>
module attributes {stable_mosaic.version = 11 : i64} {
  func.func @ffnn_kernel(%arg0: i32, %arg1: memref<8x8xi32, #tpu.memory_space<vmem>>, %arg2: memref<64x32xf32, #tpu.memory_space<vmem>>, %arg3: memref<32x128xf32, #tpu.memory_space<vmem>>, %arg4: memref<1x128xf32, #tpu.memory_space<vmem>>, %arg5: memref<128x128xf32, #tpu.memory_space<vmem>>, %arg6: memref<1x128xf32, #tpu.memory_space<vmem>>, %arg7: memref<8x128xf32, #tpu.memory_space<vmem>>) attributes {dimension_semantics = [#tpu.dimension_semantics<parallel>], iteration_bounds = array<i64: 1>, scalar_prefetch = 0 : i64, scratch_operands = 0 : i64, tpu.core_type = #tpu.core_type<tc>, window_params = [{transform_indices = @transform_0, window_bounds = array<i64: 8, 8>}, {pipeline_mode = #tpu.pipeline_mode<synchronous>, transform_indices = @transform_1, window_bounds = array<i64: 64, 32>}, {pipeline_mode = #tpu.pipeline_mode<synchronous>, transform_indices = @transform_2, window_bounds = array<i64: 32, 128>}, {pipeline_mode = #tpu.pipeline_mode<synchronous>, transform_indices = @transform_3, window_bounds = array<i64: 1, 128>}, {pipeline_mode = #tpu.pipeline_mode<synchronous>, transform_indices = @transform_4, window_bounds = array<i64: 128, 128>}, {pipeline_mode = #tpu.pipeline_mode<synchronous>, transform_indices = @transform_5, window_bounds = array<i64: 1, 128>}, {transform_indices = @transform_6, window_bounds = array<i64: 8, 128>}]} {
    %c0 = arith.constant 0 : index
    %c0_0 = arith.constant 0 : index
    %0 = vector.load %arg1[%c0, %c0_0] : memref<8x8xi32, #tpu.memory_space<vmem>>, vector<8x8xi32>
    %1 = tpu.iota {dimensions = array<i32: 1>} : vector<8x64xi32>
    %cst = arith.constant 0.000000e+00 : f32
    %2 = vector.broadcast %cst : f32 to vector<8x64xf32>
    %3 = vector.extract_strided_slice %0 {offsets = [0, 0], sizes = [8, 1], strides = [1, 1]} : vector<8x8xi32> to vector<8x1xi32>
    %4 = vector.broadcast %3 : vector<8x1xi32> to vector<8x64xi32>
    %5 = arith.cmpi eq, %4, %1 : vector<8x64xi32>
    %6 = arith.extui %5 : vector<8x64xi1> to vector<8x64xi32>
    %7 = arith.sitofp %6 : vector<8x64xi32> to vector<8x64xf32>
    %8 = arith.addf %2, %7 : vector<8x64xf32>
    %9 = vector.extract_strided_slice %0 {offsets = [0, 1], sizes = [8, 1], strides = [1, 1]} : vector<8x8xi32> to vector<8x1xi32>
    %10 = vector.broadcast %9 : vector<8x1xi32> to vector<8x64xi32>
    %11 = arith.cmpi eq, %10, %1 : vector<8x64xi32>
    %12 = arith.extui %11 : vector<8x64xi1> to vector<8x64xi32>
    %13 = arith.sitofp %12 : vector<8x64xi32> to vector<8x64xf32>
    %14 = arith.addf %8, %13 : vector<8x64xf32>
    %15 = vector.extract_strided_slice %0 {offsets = [0, 2], sizes = [8, 1], strides = [1, 1]} : vector<8x8xi32> to vector<8x1xi32>
    %16 = vector.broadcast %15 : vector<8x1xi32> to vector<8x64xi32>
    %17 = arith.cmpi eq, %16, %1 : vector<8x64xi32>
    %18 = arith.extui %17 : vector<8x64xi1> to vector<8x64xi32>
    %19 = arith.sitofp %18 : vector<8x64xi32> to vector<8x64xf32>
    %20 = arith.addf %14, %19 : vector<8x64xf32>
    %21 = vector.extract_strided_slice %0 {offsets = [0, 3], sizes = [8, 1], strides = [1, 1]} : vector<8x8xi32> to vector<8x1xi32>
    %22 = vector.broadcast %21 : vector<8x1xi32> to vector<8x64xi32>
    %23 = arith.cmpi eq, %22, %1 : vector<8x64xi32>
    %24 = arith.extui %23 : vector<8x64xi1> to vector<8x64xi32>
    %25 = arith.sitofp %24 : vector<8x64xi32> to vector<8x64xf32>
    %26 = arith.addf %20, %25 : vector<8x64xf32>
    %27 = vector.extract_strided_slice %0 {offsets = [0, 4], sizes = [8, 1], strides = [1, 1]} : vector<8x8xi32> to vector<8x1xi32>
    %28 = vector.broadcast %27 : vector<8x1xi32> to vector<8x64xi32>
    %29 = arith.cmpi eq, %28, %1 : vector<8x64xi32>
    %30 = arith.extui %29 : vector<8x64xi1> to vector<8x64xi32>
    %31 = arith.sitofp %30 : vector<8x64xi32> to vector<8x64xf32>
    %32 = arith.addf %26, %31 : vector<8x64xf32>
    %33 = vector.extract_strided_slice %0 {offsets = [0, 5], sizes = [8, 1], strides = [1, 1]} : vector<8x8xi32> to vector<8x1xi32>
    %34 = vector.broadcast %33 : vector<8x1xi32> to vector<8x64xi32>
    %35 = arith.cmpi eq, %34, %1 : vector<8x64xi32>
    %36 = arith.extui %35 : vector<8x64xi1> to vector<8x64xi32>
    %37 = arith.sitofp %36 : vector<8x64xi32> to vector<8x64xf32>
    %38 = arith.addf %32, %37 : vector<8x64xf32>
    %39 = vector.extract_strided_slice %0 {offsets = [0, 6], sizes = [8, 1], strides = [1, 1]} : vector<8x8xi32> to vector<8x1xi32>
    %40 = vector.broadcast %39 : vector<8x1xi32> to vector<8x64xi32>
    %41 = arith.cmpi eq, %40, %1 : vector<8x64xi32>
    %42 = arith.extui %41 : vector<8x64xi1> to vector<8x64xi32>
    %43 = arith.sitofp %42 : vector<8x64xi32> to vector<8x64xf32>
    %44 = arith.addf %38, %43 : vector<8x64xf32>
    %45 = vector.extract_strided_slice %0 {offsets = [0, 7], sizes = [8, 1], strides = [1, 1]} : vector<8x8xi32> to vector<8x1xi32>
    %46 = vector.broadcast %45 : vector<8x1xi32> to vector<8x64xi32>
    %47 = arith.cmpi eq, %46, %1 : vector<8x64xi32>
    %48 = arith.extui %47 : vector<8x64xi1> to vector<8x64xi32>
    %49 = arith.sitofp %48 : vector<8x64xi32> to vector<8x64xf32>
    %50 = arith.addf %44, %49 : vector<8x64xf32>
    %c0_1 = arith.constant 0 : index
    %c0_2 = arith.constant 0 : index
    %51 = vector.load %arg2[%c0_1, %c0_2] : memref<64x32xf32, #tpu.memory_space<vmem>>, vector<64x32xf32>
    %cst_3 = arith.constant dense<0.000000e+00> : vector<8x32xf32>
    %52 = tpu.matmul %50, %51, %cst_3 {dimension_numbers = #tpu.dot_dimension_numbers<[1], [0], [0], [1], [0, 0, 1, 1], [], []>} : vector<8x64xf32>, vector<64x32xf32>, vector<8x32xf32> -> vector<8x32xf32>
    %cst_4 = arith.constant 1.250000e-01 : f32
    %53 = vector.broadcast %cst_4 : f32 to vector<8x32xf32>
    %54 = arith.mulf %52, %53 : vector<8x32xf32>
    %c0_5 = arith.constant 0 : index
    %c0_6 = arith.constant 0 : index
    %55 = vector.load %arg3[%c0_5, %c0_6] : memref<32x128xf32, #tpu.memory_space<vmem>>, vector<32x128xf32>
    %cst_7 = arith.constant dense<0.000000e+00> : vector<8x128xf32>
    %56 = tpu.matmul %54, %55, %cst_7 {dimension_numbers = #tpu.dot_dimension_numbers<[1], [0], [0], [1], [0, 0, 1, 1], [], []>} : vector<8x32xf32>, vector<32x128xf32>, vector<8x128xf32> -> vector<8x128xf32>
    %c0_8 = arith.constant 0 : index
    %c0_9 = arith.constant 0 : index
    %57 = vector.load %arg4[%c0_8, %c0_9] : memref<1x128xf32, #tpu.memory_space<vmem>>, vector<1x128xf32>
    %58 = vector.broadcast %57 : vector<1x128xf32> to vector<8x128xf32>
    %59 = arith.addf %56, %58 : vector<8x128xf32>
    %cst_10 = arith.constant 0.000000e+00 : f32
    %60 = vector.broadcast %cst_10 : f32 to vector<8x128xf32>
    %61 = arith.maximumf %59, %60 : vector<8x128xf32>
    %c0_11 = arith.constant 0 : index
    %c0_12 = arith.constant 0 : index
    %62 = vector.load %arg5[%c0_11, %c0_12] : memref<128x128xf32, #tpu.memory_space<vmem>>, vector<128x128xf32>
    %cst_13 = arith.constant dense<0.000000e+00> : vector<8x128xf32>
    %63 = tpu.matmul %61, %62, %cst_13 {dimension_numbers = #tpu.dot_dimension_numbers<[1], [0], [0], [1], [0, 0, 1, 1], [], []>} : vector<8x128xf32>, vector<128x128xf32>, vector<8x128xf32> -> vector<8x128xf32>
    %c0_14 = arith.constant 0 : index
    %c0_15 = arith.constant 0 : index
    %64 = vector.load %arg6[%c0_14, %c0_15] : memref<1x128xf32, #tpu.memory_space<vmem>>, vector<1x128xf32>
    %65 = vector.broadcast %64 : vector<1x128xf32> to vector<8x128xf32>
    %66 = arith.addf %63, %65 : vector<8x128xf32>
    %c0_16 = arith.constant 0 : index
    %c0_17 = arith.constant 0 : index
    %67 = vector.load %arg7[%c0_16, %c0_17] : memref<8x128xf32, #tpu.memory_space<vmem>>, vector<8x128xf32>
    tpu.vector_store %arg7[%c0_16, %c0_17], %66 {strides = array<i32>} : memref<8x128xf32, #tpu.memory_space<vmem>>, vector<8x128xf32>,
    return
  }
  func.func @transform_0(%arg0: i32) -> (i32, i32) {
    %c0_i32 = arith.constant 0 : i32
    %c0_i32_0 = arith.constant 0 : i32
    return %arg0, %c0_i32 : i32, i32
  }
  func.func @transform_1(%arg0: i32) -> (i32, i32) {
    %c0_i32 = arith.constant 0 : i32
    %c0_i32_0 = arith.constant 0 : i32
    %c0_i32_1 = arith.constant 0 : i32
    return %c0_i32, %c0_i32_0 : i32, i32
  }
  func.func @transform_2(%arg0: i32) -> (i32, i32) {
    %c0_i32 = arith.constant 0 : i32
    %c0_i32_0 = arith.constant 0 : i32
    %c0_i32_1 = arith.constant 0 : i32
    return %c0_i32, %c0_i32_0 : i32, i32
  }
  func.func @transform_3(%arg0: i32) -> (i32, i32) {
    %c0_i32 = arith.constant 0 : i32
    %c0_i32_0 = arith.constant 0 : i32
    %c0_i32_1 = arith.constant 0 : i32
    return %c0_i32, %c0_i32_0 : i32, i32
  }
  func.func @transform_4(%arg0: i32) -> (i32, i32) {
    %c0_i32 = arith.constant 0 : i32
    %c0_i32_0 = arith.constant 0 : i32
    %c0_i32_1 = arith.constant 0 : i32
    return %c0_i32, %c0_i32_0 : i32, i32
  }
  func.func @transform_5(%arg0: i32) -> (i32, i32) {
    %c0_i32 = arith.constant 0 : i32
    %c0_i32_0 = arith.constant 0 : i32
    %c0_i32_1 = arith.constant 0 : i32
    return %c0_i32, %c0_i32_0 : i32, i32
  }
  func.func @transform_6(%arg0: i32) -> (i32, i32) {
    %c0_i32 = arith.constant 0 : i32
    %c0_i32_0 = arith.constant 0 : i32
    return %arg0, %c0_i32 : i32, i32
  }
}

</mosaic_0001>

<bundles_post_ra>
// kernel: ffnn_forward.1
= control target key start
LH: loop header
LB: loop body
LE: loop exit
PB: predicated region body
PF: predicated region fallthrough
CT: control target
= control target key end

     0   :  { %11 = vsyncpa [#allocation3], 0  ;;  %s269_s24 = smov [#allocation2]   ;;  %s270_s26 = smov 128   ;;  %s367_s0 = inlined_call_operand.vmem [shape: s32[8,8], index: 0, kind: input, shape index: {}]   ;;  %s368_s1 = inlined_call_operand.vmem [shape: f32[64,32], index: 1, kind: input, shape index: {}]   ;;  %s369_s2 = inlined_call_operand.vmem [shape: f32[32,128], index: 2, kind: input, shape index: {}]   ;;  %s370_s3 = inlined_call_operand.vmem [shape: f32[1,128], index: 3, kind: input, shape index: {}]   ;;  %s371_s4 = inlined_call_operand.hbm [shape: f32[128,128], index: 4, kind: input, shape index: {}]   ;;  %s372_s5 = inlined_call_operand.vmem [shape: f32[1,128], index: 5, kind: input, shape index: {}]   ;;  %s373_s6 = inlined_call_operand.vmem [shape: f32[8,128], index: 6, kind: output, shape index: {}]  }
   0x1   :  { %s24_s23 = sshll.u32 %s371_s4, 4  ;;  %s26_s25 = sshll.u32 %s269_s24, 4  ;;  %s25_s23 = int_to_ptr.hbm [resolvable:$true] %s24_s23  ;;  %s27_s25 = int_to_ptr.vmem [resolvable:$true] %s26_s25 }
   0x2   :  { %s271_s27 = smov 8  }
   0x3   :  { %32 = dma.hbm_to_vmem [thread:$0]  %s25_s23, 2048, %s27_s25, [#allocation3], %s270_s26, %s270_s26, %s271_s27  }
   0x4   :  { %267 = dma.done.wait [#allocation3], 2048  }
   0x5   :  { %268 = vsyncadd [#allocation3], 4294965248  ;;  %v272_v0 = vmov 0   ;;  %v273_v1 = vmov 2   ;;  %v274_v2 = vmov 4   ;;  %v39_v3 = vld [vmem:[%s367_s0] sm:$0xff]  ;;  %v40_v20 = vlaneseq }
   0x6   :  { %232 = vset.pattern.permute.xlu0 %v272_v0  ;;  %234 = vset.pattern.permute.xlu1 %v273_v1  ;;  %v275_v4 = vmov 1   ;;  %v276_v5 = vmov 3   ;;  %v277_v6 = vmov 5   ;;  %v278_v7 = vmov 6   ;;  %v105_v9 = vld [vmem:[%s368_s1 + $0x38] sm:$0xff]  ;;  %v104_v10 = vld [vmem:[%s368_s1 + $0x30] sm:$0xff] }
   0x7   :  { %236 = vset.pattern.permute.xlu2 %v274_v2  ;;  %43 = vperm.xlu0 %232, %v39_v3   ;;  %v279_v8 = vmov 7   ;;  %v103_v11 = vld [vmem:[%s368_s1 + $0x28] sm:$0xff]  ;;  %v102_v12 = vld [vmem:[%s368_s1 + $0x20] sm:$0xff]  ;;  %v101_v13 = vld [vmem:[%s368_s1 + $0x18] sm:$0xff]  ;;  %v41_v23 = vand.u32 127, %v40_v20  ;;  %v280_v27 = vmov 0.0  }
   0x8   :  { %57 = vperm.xlu1 %234, %v39_v3   ;;  %71 = vperm.xlu2 %236, %v39_v3   ;;  %v100_v14 = vld [vmem:[%s368_s1 + $0x10] sm:$0xff]  ;;  %v99_v15 = vld [vmem:[%s368_s1 + $0x8] sm:$0xff]  ;;  %v98_v16 = vld [vmem:[%s368_s1] sm:$0xff]  ;;  %vm106_vm8 = vcmask 523264   ;;  %vm139_vm9 = vcmask 261120  }
   0x9   :  { %118 = vmatpush.msra.mxu0 %v105_v9  ;;  %v134_v17 = vld [vmem:[%s369_s2 + $0x18] sm:$0xff]  ;;  %v133_v18 = vld [vmem:[%s369_s2 + $0x10] sm:$0xff]  ;;  %v132_v45 = vld [vmem:[%s369_s2 + $0x8] sm:$0xff] }
   0xa   :  { %155 = vmatpush.msra.mxu1 %v134_v17  ;;  %v131_v46 = vld [vmem:[%s369_s2] sm:$0xff]  ;;  %v179_v47 = vld [vmem:[#allocation2 + $0x78] sm:$0xff]  ;;  %v178_v48 = vld [vmem:[#allocation2 + $0x70] sm:$0xff] }
   0xb   :  { %119 = vmatpush.msra.mxu0 %v104_v10  ;;  %184 = vmatpush.msra.mxu2 %v179_v47  ;;  %v177_v49 = vld [vmem:[#allocation2 + $0x68] sm:$0xff]  ;;  %v176_v50 = vld [vmem:[#allocation2 + $0x60] sm:$0xff]  ;;  %v175_v51 = vld [vmem:[#allocation2 + $0x58] sm:$0xff] }
   0xc   :  { %156 = vmatpush.msra.mxu1 %v133_v18  ;;  %v174_v52 = vld [vmem:[#allocation2 + $0x50] sm:$0xff]  ;;  %v173_v53 = vld [vmem:[#allocation2 + $0x48] sm:$0xff]  ;;  %v172_v54 = vld [vmem:[#allocation2 + $0x40] sm:$0xff] }
   0xd   :  { %120 = vmatpush.msra.mxu0 %v103_v11  ;;  %185 = vmatpush.msra.mxu2 %v178_v48  ;;  %v171_v55 = vld [vmem:[#allocation2 + $0x38] sm:$0xff]  ;;  %v170_v56 = vld [vmem:[#allocation2 + $0x30] sm:$0xff]  ;;  %v169_v57 = vld [vmem:[#allocation2 + $0x28] sm:$0xff] }
   0xe   :  { %157 = vmatpush.msra.mxu1 %v132_v45  ;;  %v168_v58 = vld [vmem:[#allocation2 + $0x20] sm:$0xff]  ;;  %v167_v59 = vld [vmem:[#allocation2 + $0x18] sm:$0xff]  ;;  %v166_v62 = vld [vmem:[#allocation2 + $0x10] sm:$0xff] }
   0xf   :  { %233 = vset.pattern.permute.xlu0 %v275_v4  ;;  %121 = vmatpush.msra.mxu0 %v102_v12  ;;  %v165_v63 = vld [vmem:[#allocation2 + $0x8] sm:$0xff]  ;;  %v164_v0 = vld [vmem:[#allocation2] sm:$0xff] }
  0x10   :  { %235 = vset.pattern.permute.xlu1 %v276_v5  ;;  %50 = vperm.xlu0 %233, %v39_v3   ;;  %v241_v1 = vld [vmem:[%s370_s3] ss:$0 sm:$0xff] }
  0x11   :  { %64 = vperm.xlu1 %235, %v39_v3   ;;  %237 = vset.pattern.permute.xlu2 %v277_v6  ;;  %v242_v5 = vld [vmem:[%s372_s5] ss:$0 sm:$0xff] }
  0x12   :  { %78 = vperm.xlu2 %237, %v39_v3   ;;  %122 = vmatpush.msra.mxu0 %v101_v13 }
  0x13   :  { %158 = vmatpush.msra.mxu1 %v131_v46  ;;  %186 = vmatpush.msra.mxu2 %v177_v49 }
  0x14   :  { %123 = vmatpush.msra.mxu0 %v100_v14 }
  0x15   :  { %187 = vmatpush.msra.mxu2 %v176_v50 }
  0x16   :  { %124 = vmatpush.msra.mxu0 %v99_v15 }
  0x17   :  { %188 = vmatpush.msra.mxu2 %v175_v51 }
  0x18   :  { %240 = vset.pattern.permute.xlu0 %v279_v8  ;;  %125 = vmatpush.msra.mxu0 %v98_v16 }
  0x19   :  { %238 = vset.pattern.permute.xlu1 %v278_v7  ;;  %189 = vmatpush.msra.mxu2 %v174_v52 }
  0x1a   :  { %85 = vperm.xlu1 %238, %v39_v3   ;;  %239 = vset.pattern.permute.xlu2 %v279_v8 }
  0x1b   :  { %92 = vperm.xlu2 %239, %v39_v3   ;;  %190 = vmatpush.msra.mxu2 %v173_v53 }
  0x1d   :  { %191 = vmatpush.msra.mxu2 %v172_v54 }
  0x1f   :  { %192 = vmatpush.msra.mxu2 %v171_v55 }
  0x21   :  { %193 = vmatpush.msra.mxu2 %v170_v56 }
  0x23   :  { %194 = vmatpush.msra.mxu2 %v169_v57 }
  0x25   :  { %195 = vmatpush.msra.mxu2 %v168_v58 }
  0x27   :  { %196 = vmatpush.msra.mxu2 %v167_v59 }
  0x29   :  { %197 = vmatpush.msra.mxu2 %v166_v62 }
  0x2b   :  { %198 = vmatpush.msra.mxu2 %v165_v63 }
  0x2d   :  { %199 = vmatpush.msra.mxu2 %v164_v0 }
  0x62   :  { %v72_v19 = vpop.permute.xlu2 %71 }
  0x63   :  { %vm73_vm4 = vcmp.eq.s32.totalorder %v72_v19, %v41_v23 }
  0x64   :  { %v214_v36 = vsel %vm73_vm4, 1.0, %v280_v27 }
  0x6c   :  { %v79_v24 = vpop.permute.xlu2 %78 }
  0x6d   :  { %vm80_vm5 = vcmp.eq.s32.totalorder %v79_v24, %v41_v23 }
  0x6e   :  { %v215_v39 = vsel %vm80_vm5, 1.0, %v280_v27 }
  0x75   :  { %v93_v34 = vpop.permute.xlu2 %92 }
  0x76   :  { %vm94_vm6 = vcmp.eq.s32.totalorder %v93_v34, %v41_v23 }
  0x77   :  { %v217_v42 = vsel %vm94_vm6, 1.0, %v280_v27 }
  0x79   :  { %v44_v21 = vpop.permute.xlu0 %43 }
  0x7a   :  { %v58_v22 = vpop.permute.xlu1 %57  ;;  %vm45_vm0 = vcmp.eq.s32.totalorder %v44_v21, %v41_v23 }
  0x7b   :  { %vm59_vm1 = vcmp.eq.s32.totalorder %v58_v22, %v41_v23  ;;  %v210_v28 = vsel %vm45_vm0, 1.0, %v280_v27 }
  0x7c   :  { %v212_v31 = vsel %vm59_vm1, 1.0, %v280_v27 }
  0x82   :  { %v51_v25 = vpop.permute.xlu0 %50 }
  0x83   :  { %v65_v26 = vpop.permute.xlu1 %64  ;;  %vm52_vm2 = vcmp.eq.s32.totalorder %v51_v25, %v41_v23 }
  0x84   :  { %v211_v29 = vsel %vm52_vm2, 1.0, %v280_v27  ;;  %vm66_vm3 = vcmp.eq.s32.totalorder %v65_v26, %v41_v23 }
  0x85   :  { %v55_v30 = vadd.f32 %v211_v29, %v210_v28  ;;  %v213_v33 = vsel %vm66_vm3, 1.0, %v280_v27 }
  0x87   :  { %v62_v32 = vadd.f32 %v212_v31, %v55_v30 }
  0x89   :  { %v69_v35 = vadd.f32 %v213_v33, %v62_v32 }
  0x8b   :  { %v76_v37 = vadd.f32 %v214_v36, %v69_v35 }
  0x8c   :  { %v86_v38 = vpop.permute.xlu1 %85 }
  0x8d   :  { %vm87_vm7 = vcmp.eq.s32.totalorder %v86_v38, %v41_v23  ;;  %v83_v40 = vadd.f32 %v215_v39, %v76_v37 }
  0x8e   :  { %v216_v41 = vsel %vm87_vm7, 1.0, %v280_v27 }
  0x8f   :  { %v90_v43 = vadd.f32 %v216_v41, %v83_v40 }
  0x91   :  { %v97_v44 = vadd.f32 %v217_v42, %v90_v43 }
  0x93   :  { %218 = vmatmul.msk.f32.vlgmr.msra.gmra.mxu0 %vm106_vm8, %v97_v44 }
 0x110   :  { %v127_v60 = vpop.f32.mrf.mxu0 }
 0x111   :  { %v130_v61 = vmul.f32 0.125, %v127_v60 }
 0x113   :  { %219 = vmatmul.msk.f32.vlgmr.msra.gmra.mxu1 %vm139_vm9, %v130_v61 }
 0x190   :  { %v160_v2 = vpop.f32.mrf.mxu1 }
 0x191   :  { %v161_v3 = vadd.f32 %v241_v1, %v160_v2 }
 0x193   :  { %v163_v4 = vmax.f32 %v161_v3, 0.0 }
 0x195   :  { %200 = vmatmul.f32.vlgmr.msra.gmra.mxu2 %v163_v4 }
 0x218   :  { %v201_v6 = vpop.f32.mrf.mxu2 }
 0x219   :  { %v202_v7 = vadd.f32 %v242_v5, %v201_v6 }
 0x21b   :  { %204 = vst [vmem:[%s373_s6] sm:$0xff] %v202_v7 }
 0x21c   :  { %209 = vsyncpa [#allocation3], 1 }

</bundles_post_ra>
